<compile_context>
chip_gen: v6e
topology: v6e:2x2x1
jax: 0.10.0
libtpu: 0.0.40
codegen_flags: <defaults>
</compile_context>

<pallas_src>
import math
import functools

import jax
import jax.numpy as jnp
from jax import lax
from jax.experimental import pallas as pl
from jax.experimental.pallas import tpu as pltpu


# ---------------------------------------------------------------------------
# 1) Hoisted input projection: y = x @ W + b  (wide GEMM, bf16 MXU, f32 acc)
# ---------------------------------------------------------------------------
def _proj_kernel(x_ref, w_ref, b_ref, o_ref, acc_ref):
    @pl.when(pl.program_id(2) == 0)
    def _():
        acc_ref[...] = jnp.zeros_like(acc_ref)

    acc_ref[...] += jnp.dot(x_ref[...], w_ref[...],
                            preferred_element_type=jnp.float32)

    @pl.when(pl.program_id(2) == pl.num_programs(2) - 1)
    def _():
        o_ref[...] = (acc_ref[...] + b_ref[...]).astype(o_ref.dtype)


def _project(x2d, w, b, *, tm=256, tn=512, tk=512):
    """x2d: (M, E) f32, w: (E, N), b: (1, N).  Returns (M, N) bf16."""
    M, E = x2d.shape
    N = w.shape[1]
    tm, tn, tk = min(tm, M), min(tn, N), min(tk, E)
    assert M % tm == 0 and N % tn == 0 and E % tk == 0, "dims must tile evenly"
    return pl.pallas_call(
        _proj_kernel,
        out_shape=jax.ShapeDtypeStruct((M, N), jnp.bfloat16),
        grid_spec=pltpu.PrefetchScalarGridSpec(
            num_scalar_prefetch=0,
            grid=(M // tm, N // tn, E // tk),
            in_specs=[pl.BlockSpec((tm, tk), lambda i, j, k: (i, k)),
                      pl.BlockSpec((tk, tn), lambda i, j, k: (k, j)),
                      pl.BlockSpec((1, tn), lambda i, j, k: (0, j))],
            out_specs=pl.BlockSpec((tm, tn), lambda i, j, k: (i, j)),
            scratch_shapes=[pltpu.VMEM((tm, tn), jnp.float32)]),
        compiler_params=pltpu.CompilerParams(
            dimension_semantics=("parallel", "parallel", "arbitrary"),
            vmem_limit_bytes=48 * 1024 * 1024),
    )(x2d.astype(jnp.bfloat16), w.astype(jnp.bfloat16),
      b.reshape(1, N).astype(jnp.float32))


# ---------------------------------------------------------------------------
# 2) Flash attention over projected heads + fused output projection
# ---------------------------------------------------------------------------
def _mha_flash_kernel(q_ref, k_ref, v_ref, wo_ref, bo_ref, o_ref,
                      m_scr, l_scr, ctx_scr,
                      *, num_heads, value_dim, scale):
    # grid = (batch, q_tile, kv_tile); kv is the (innermost) reduction axis.
    kv = pl.program_id(2)
    last_kv = pl.num_programs(2) - 1

    # First kv step of this (batch, q_tile): reset online-softmax state.
    @pl.when(kv == 0)
    def _():
        m_scr[...] = jnp.full_like(m_scr, -jnp.inf)
        l_scr[...] = jnp.zeros_like(l_scr)
        ctx_scr[...] = jnp.zeros_like(ctx_scr)

    # All heads handled per grid step (static unroll -> static scratch offsets).
    for h in range(num_heads):
        cols = slice(h * value_dim, (h + 1) * value_dim)

        qh = q_ref[0, h]                  # (tq, dk) bf16 (pre-projected)
        kh = k_ref[0, h]                  # (tk, dk) bf16
        vh = v_ref[0, h]                  # (tk, dv) bf16

        # Scores: contract the last dims of Q and K directly (no transpose).
        s = lax.dot_general(qh, kh,
                            dimension_numbers=(((1,), (1,)), ((), ())),
                            preferred_element_type=jnp.float32) * scale

        # TODO(synk): optional attention mask (mask=None path only).

        # Online softmax update (f32 elementwise math; v5e-safe).
        m_prev = m_scr[h]
        m_new = jnp.maximum(m_prev, jnp.max(s, axis=-1, keepdims=True))
        alpha = jnp.exp(m_prev - m_new)
        p = jnp.exp(s - m_new)

        l_scr[h] = alpha * l_scr[h] + jnp.sum(p, axis=-1, keepdims=True)
        pv = jnp.dot(p.astype(jnp.bfloat16), vh,
                     preferred_element_type=jnp.float32)
        ctx_scr[:, cols] = alpha * ctx_scr[:, cols] + pv
        m_scr[h] = m_new

    # Last kv tile: normalize each head (exact divide, runs once per q_tile),
    # then ONE full-K output projection (tq, H*dv) @ (H*dv, E) + bias, stored
    # straight to the VMEM-resident output tile (single HBM write per tile).
    @pl.when(kv == last_kv)
    def _():
        for h in range(num_heads):
            cols = slice(h * value_dim, (h + 1) * value_dim)
            ctx_scr[:, cols] = ctx_scr[:, cols] * (1.0 / l_scr[h])
        out = jnp.dot(ctx_scr[...].astype(jnp.bfloat16), wo_ref[...],
                      preferred_element_type=jnp.float32) + bo_ref[...]
        o_ref[0] = out.astype(o_ref.dtype)


def multi_head_attention(query, key, value, params, *,
                         num_heads, key_dim, value_dim, tq=128, tk=256):
    """query/key/value: (B, L, E) float32.  Returns (B, L, E) float32."""
    B, L, E = query.shape
    wq, bq, wk, bk, wv, bv, wo, bo = params

    tq, tk = min(tq, L), min(tk, L)
    assert L % tq == 0 and L % tk == 0, "sequence length must tile evenly"

    # Hoisted projections (wide tiled GEMMs), then head-major (B, H, L, d)
    # layout — pure layout plumbing done once by XLA outside the flash loop.
    def proj_heads(x, w, b, d):
        y = _project(x.reshape(B * L, E), w, b)              # (B*L, H*d) bf16
        return y.reshape(B, L, num_heads, d).transpose(0, 2, 1, 3)

    qp = proj_heads(query, wq, bq, key_dim)                  # (B, H, L, dk)
    kp = proj_heads(key, wk, bk, key_dim)                    # (B, H, L, dk)
    vp = proj_heads(value, wv, bv, value_dim)                # (B, H, L, dv)

    wo_b = wo.astype(jnp.bfloat16)                           # (H*dv, E)
    bo_f = bo.reshape(1, E).astype(jnp.float32)

    kernel = functools.partial(_mha_flash_kernel,
                               num_heads=num_heads, value_dim=value_dim,
                               scale=1.0 / math.sqrt(key_dim))

    dk, dv = key_dim, value_dim
    return pl.pallas_call(
        kernel,
        out_shape=jax.ShapeDtypeStruct((B, L, E), jnp.float32),
        grid_spec=pltpu.PrefetchScalarGridSpec(
            num_scalar_prefetch=0,
            grid=(B, L // tq, L // tk),
            in_specs=[
                pl.BlockSpec((1, num_heads, tq, dk), lambda b, qi, kv: (b, 0, qi, 0)),
                pl.BlockSpec((1, num_heads, tk, dk), lambda b, qi, kv: (b, 0, kv, 0)),
                pl.BlockSpec((1, num_heads, tk, dv), lambda b, qi, kv: (b, 0, kv, 0)),
                pl.BlockSpec((num_heads * dv, E), lambda b, qi, kv: (0, 0)),
                pl.BlockSpec((1, E), lambda b, qi, kv: (0, 0)),
            ],
            out_specs=pl.BlockSpec((1, tq, E), lambda b, qi, kv: (b, qi, 0)),
            scratch_shapes=[
                pltpu.VMEM((num_heads, tq, 1), jnp.float32),      # running max
                pltpu.VMEM((num_heads, tq, 1), jnp.float32),      # running denom
                pltpu.VMEM((tq, num_heads * dv), jnp.float32),    # head contexts
            ]),
        compiler_params=pltpu.CompilerParams(
            dimension_semantics=("parallel", "parallel", "arbitrary"),
            vmem_limit_bytes=48 * 1024 * 1024),
    )(qp, kp, vp, wo_b, bo_f)


# ---------------------------------------------------------------------------
# Pure-JAX f32 reference matching the PyTorch forward pass (mask=None)
# ---------------------------------------------------------------------------
def _reference(query, key, value, params, *, num_heads, key_dim, value_dim):
    wq, bq, wk, bk, wv, bv, wo, bo = params
    B, L, E = query.shape
    Q = query @ wq + bq
    K = key @ wk + bk
    V = value @ wv + bv

    def split(t, d):
        return t.reshape(B, L, num_heads, d).transpose(0, 2, 1, 3)

    Qh, Kh, Vh = split(Q, key_dim), split(K, key_dim), split(V, value_dim)
    scores = jnp.einsum("bhqd,bhkd->bhqk", Qh, Kh) / math.sqrt(key_dim)
    probs = jax.nn.softmax(scores, axis=-1)
    ctx = jnp.einsum("bhqk,bhkd->bhqd", probs, Vh)
    ctx = ctx.transpose(0, 2, 1, 3).reshape(B, L, num_heads * value_dim)
    return ctx @ wo + bo


if __name__ == "__main__":
    # Small shapes consistent with the module.
    B, L, E = 2, 8, 32
    H = 4
    d_k = d_v = E // H  # 8 (split_heads requires key_dim == value_dim anyway)

    key0 = jax.random.PRNGKey(0)
    keys = jax.random.split(key0, 12)

    # Deterministic synthetic parameters (nn.Linear shapes, stored as (in, out)).
    def init_linear(kw, kb, fan_in, fan_out):
        bound = 1.0 / math.sqrt(fan_in)
        w = jax.random.uniform(kw, (fan_in, fan_out), jnp.float32, -bound, bound)
        b = jax.random.uniform(kb, (1, fan_out), jnp.float32, -bound, bound)
        return w, b

    wq, bq = init_linear(keys[0], keys[1], E, H * d_k)
    wk, bk = init_linear(keys[2], keys[3], E, H * d_k)
    wv, bv = init_linear(keys[4], keys[5], E, H * d_v)
    wo, bo = init_linear(keys[6], keys[7], H * d_v, E)
    params = (wq, bq, wk, bk, wv, bv, wo, bo)

    query = jax.random.normal(keys[8], (B, L, E), jnp.float32)
    key_in = jax.random.normal(keys[9], (B, L, E), jnp.float32)
    value = jax.random.normal(keys[10], (B, L, E), jnp.float32)

    out = multi_head_attention(query, key_in, value, params,
                               num_heads=H, key_dim=d_k, value_dim=d_v)
    out = jax.block_until_ready(out)

    ref = _reference(query, key_in, value, params,
                     num_heads=H, key_dim=d_k, value_dim=d_v)
    assert out.shape == (B, L, E)
    # bf16 MXU operands (f32 accumulation) -> loosened tolerance vs f32 reference.
    assert jnp.allclose(out, ref, atol=5e-2, rtol=5e-2), "mismatch vs reference"

    print("KERNEL_OK")
</pallas_src>

<mosaic_0001>
module attributes {stable_mosaic.version = 11 : i64} {
  func.func @_proj_kernel(%arg0: i32, %arg1: i32, %arg2: i32, %arg3: memref<16x32xbf16, #tpu.memory_space<vmem>>, %arg4: memref<32x32xbf16, #tpu.memory_space<vmem>>, %arg5: memref<1x32xf32, #tpu.memory_space<vmem>>, %arg6: memref<16x32xbf16, #tpu.memory_space<vmem>>, %arg7: memref<16x32xf32, #tpu.memory_space<vmem>>) attributes {dimension_semantics = [#tpu.dimension_semantics<parallel>, #tpu.dimension_semantics<parallel>, #tpu.dimension_semantics<arbitrary>], iteration_bounds = array<i64: 1, 1, 1>, scalar_prefetch = 0 : i64, scratch_operands = 1 : i64, tpu.core_type = #tpu.core_type<tc>, window_params = [{transform_indices = @transform_0, window_bounds = array<i64: 16, 32>}, {transform_indices = @transform_1, window_bounds = array<i64: 32, 32>}, {transform_indices = @transform_2, window_bounds = array<i64: 1, 32>}, {transform_indices = @transform_3, window_bounds = array<i64: 16, 32>}]} {
    %c0_i32 = arith.constant 0 : i32
    %0 = arith.cmpi eq, %arg2, %c0_i32 : i32
    %1 = arith.extui %0 : i1 to i32
    %c0_i32_0 = arith.constant 0 : i32
    %2 = arith.cmpi ne, %1, %c0_i32_0 : i32
    scf.if %2 {
      %cst_10 = arith.constant 0.000000e+00 : f32
      %12 = vector.broadcast %cst_10 : f32 to vector<16x32xf32>
      %c0_11 = arith.constant 0 : index
      %c0_12 = arith.constant 0 : index
      %13 = vector.load %arg7[%c0_11, %c0_12] : memref<16x32xf32, #tpu.memory_space<vmem>>, vector<16x32xf32>
      tpu.vector_store %arg7[%c0_11, %c0_12], %12 {strides = array<i32>} : memref<16x32xf32, #tpu.memory_space<vmem>>, vector<16x32xf32>,
    } else {
    }
    %c0 = arith.constant 0 : index
    %c0_1 = arith.constant 0 : index
    %3 = vector.load %arg7[%c0, %c0_1] : memref<16x32xf32, #tpu.memory_space<vmem>>, vector<16x32xf32>
    %c0_2 = arith.constant 0 : index
    %c0_3 = arith.constant 0 : index
    %4 = vector.load %arg3[%c0_2, %c0_3] : memref<16x32xbf16, #tpu.memory_space<vmem>>, vector<16x32xbf16>
    %c0_4 = arith.constant 0 : index
    %c0_5 = arith.constant 0 : index
    %5 = vector.load %arg4[%c0_4, %c0_5] : memref<32x32xbf16, #tpu.memory_space<vmem>>, vector<32x32xbf16>
    %cst = arith.constant dense<0.000000e+00> : vector<16x32xf32>
    %6 = tpu.matmul %4, %5, %cst {dimension_numbers = #tpu.dot_dimension_numbers<[1], [0], [0], [1], [0, 0, 1, 1], [], []>} : vector<16x32xbf16>, vector<32x32xbf16>, vector<16x32xf32> -> vector<16x32xf32>
    %7 = arith.addf %3, %6 : vector<16x32xf32>
    %c0_6 = arith.constant 0 : index
    %c0_7 = arith.constant 0 : index
    %8 = vector.load %arg7[%c0_6, %c0_7] : memref<16x32xf32, #tpu.memory_space<vmem>>, vector<16x32xf32>
    tpu.vector_store %arg7[%c0_6, %c0_7], %7 {strides = array<i32>} : memref<16x32xf32, #tpu.memory_space<vmem>>, vector<16x32xf32>,
    %c0_i32_8 = arith.constant 0 : i32
    %9 = arith.cmpi eq, %arg2, %c0_i32_8 : i32
    %10 = arith.extui %9 : i1 to i32
    %c0_i32_9 = arith.constant 0 : i32
    %11 = arith.cmpi ne, %10, %c0_i32_9 : i32
    scf.if %11 {
      %c0_10 = arith.constant 0 : index
      %c0_11 = arith.constant 0 : index
      %12 = vector.load %arg7[%c0_10, %c0_11] : memref<16x32xf32, #tpu.memory_space<vmem>>, vector<16x32xf32>
      %c0_12 = arith.constant 0 : index
      %c0_13 = arith.constant 0 : index
      %13 = vector.load %arg5[%c0_12, %c0_13] : memref<1x32xf32, #tpu.memory_space<vmem>>, vector<1x32xf32>
      %14 = vector.broadcast %13 : vector<1x32xf32> to vector<16x32xf32>
      %15 = arith.addf %12, %14 : vector<16x32xf32>
      %16 = arith.truncf %15 : vector<16x32xf32> to vector<16x32xbf16>
      %c0_14 = arith.constant 0 : index
      %c0_15 = arith.constant 0 : index
      %17 = vector.load %arg6[%c0_14, %c0_15] : memref<16x32xbf16, #tpu.memory_space<vmem>>, vector<16x32xbf16>
      tpu.vector_store %arg6[%c0_14, %c0_15], %16 {strides = array<i32>} : memref<16x32xbf16, #tpu.memory_space<vmem>>, vector<16x32xbf16>,
    } else {
    }
    return
  }
  func.func @transform_0(%arg0: i32, %arg1: i32, %arg2: i32) -> (i32, i32) {
    %c0_i32 = arith.constant 0 : i32
    return %arg0, %arg2 : i32, i32
  }
  func.func @transform_1(%arg0: i32, %arg1: i32, %arg2: i32) -> (i32, i32) {
    %c0_i32 = arith.constant 0 : i32
    return %arg2, %arg1 : i32, i32
  }
  func.func @transform_2(%arg0: i32, %arg1: i32, %arg2: i32) -> (i32, i32) {
    %c0_i32 = arith.constant 0 : i32
    %c0_i32_0 = arith.constant 0 : i32
    return %c0_i32, %arg1 : i32, i32
  }
  func.func @transform_3(%arg0: i32, %arg1: i32, %arg2: i32) -> (i32, i32) {
    %c0_i32 = arith.constant 0 : i32
    return %arg0, %arg1 : i32, i32
  }
}

</mosaic_0001>

<bundles_post_ra>
// kernel: tpu_custom_call.1
= control target key start
LH: loop header
LB: loop body
LE: loop exit
PB: predicated region body
PF: predicated region fallthrough
CT: control target
= control target key end

     0   :  { %8 = vsyncpa [#allocation4], 0  ;;  %s317_s0 = inlined_call_operand.hbm [shape: bf16[16,32], index: 0, kind: input, shape index: {}]   ;;  %s318_s1 = inlined_call_operand.hbm [shape: bf16[32,32], index: 1, kind: input, shape index: {}]   ;;  %s319_s2 = inlined_call_operand.vmem [shape: f32[1,32], index: 2, kind: input, shape index: {}]   ;;  %s320_s3 = inlined_call_operand.hbm [shape: bf16[16,32], index: 3, kind: output, shape index: {}]  }
   0x1   :  { %9 = vsyncpa [#allocation7], 0 }
   0x2   :  { %10 = vsyncpa [#allocation5], 0  ;;  %s264_s12 = smov [#allocation3]  }
   0x3   :  { %s16_s13 = sshll.u32 %s264_s12, 4  ;;  %s17_s13 = int_to_ptr.vmem [resolvable:$true] %s16_s13 }
   0x4   :  { %s206_s14 = scalar_lea.vmem %s17_s13, 128  ;;  %p211_p1 = scmp.lt.s32.totalorder %s17_s13, %s17_s13 }
   0x5   :  { %p207_p0 = scmp.ne.s32.totalorder %s17_s13, %s206_s14  ;;  %p212_p2 = scmp.lt.s32.totalorder %s206_s14, %s206_s14 }
   0x7   :  { %p213_p3 = por %p212_p2, %p211_p1 }
   0x9   :  { %p214_p4 = pnand %p213_p3, %p207_p0 }
   0xb   :  { %217 = shalt.err (!%p214_p4)
}
   0xc   :  { %s265_s15 = smov 64   ;;  %s266_s16 = smov 4  }
   0xd   :  { %22 = dma.hbm_to_vmem [thread:$0]  %s317_s0, 128, %s17_s13, [#allocation4], %s265_s15, %s265_s15, %s266_s16  }
   0xe   :  { %s267_s19 = smov [#allocation6]  }
   0xf   :  { %s28_s20 = sshll.u32 %s267_s19, 4  ;;  %s29_s20 = int_to_ptr.vmem [resolvable:$true] %s28_s20 }
  0x10   :  { %s226_s21 = scalar_lea.vmem %s29_s20, 256  ;;  %p231_p6 = scmp.lt.s32.totalorder %s29_s20, %s29_s20 }
  0x11   :  { %p227_p5 = scmp.ne.s32.totalorder %s29_s20, %s226_s21  ;;  %p232_p7 = scmp.lt.s32.totalorder %s226_s21, %s226_s21 }
  0x13   :  { %p233_p8 = por %p232_p7, %p231_p6 }
  0x15   :  { %p234_p9 = pnand %p233_p8, %p227_p5 }
  0x17   :  { %237 = shalt.err (!%p234_p9)
}
  0x18   :  { %34 = dma.hbm_to_vmem [thread:$0]  %s318_s1, 256, %s29_s20, [#allocation7], %s265_s15, %s265_s15, %s266_s16  }
  0x19   :  { %258 = dma.done.wait [#allocation4], 128  }
  0x1a   :  { %259 = vsyncadd [#allocation4], 4294967168 }
  0x1b   :  { %260 = dma.done.wait [#allocation7], 256  }
  0x1c   :  { %261 = vsyncadd [#allocation7], 4294967040  ;;  %vm48_vm0 = vcmask 261120   ;;  %v268_v0 = vmov 0.0   ;;  %vm269_vm1 = vmmov 0   ;;  %v195_v1 = vld [vmem:[#allocation6 + $0x8] sm:$0xff]  }
  0x1d   :  { %180 = vmatprep.subr.bf16.mxu0 %v268_v0  ;;  %184 = vmatprep.mubr.msk.bf16.mxu0 %vm269_vm1, %v268_v0  ;;  %49 = vst.msk [vmem:[#allocation2] sm:$0xff] %vm48_vm0, %v268_v0  ;;  %50 = vst.msk [vmem:[#allocation2 + $0x8] sm:$0xff] %vm48_vm0, %v268_v0  ;;  %v196_v2 = vld [vmem:[#allocation6] sm:$0xff]   ;;  %v197_v3 = vld [vmem:[#allocation3] sm:$0xff]   ;;  %vm147_vm2 = vcmask 257024   ;;  %s270_s24 = smov [#allocation8]  }
  0x1e   :  { %181 = vmatpush3.bf16.msra.mxu0 %v195_v1  ;;  %v172_v12 = vld [vmem:[%s319_s2] ss:$0 sm:$0xff]  ;;  %s155_s25 = sshll.u32 %s270_s24, 4  ;;  %s156_s25 = int_to_ptr.vmem [resolvable:$true] %s155_s25 }
  0x1f   :  { %182 = vmatprep.subr.bf16.mxu0 %v268_v0  ;;  %s238_s26 = scalar_lea.vmem %s156_s25, 128  ;;  %p243_p11 = scmp.lt.s32.totalorder %s156_s25, %s156_s25 }
  0x20   :  { %p239_p10 = scmp.ne.s32.totalorder %s156_s25, %s238_s26  ;;  %p244_p12 = scmp.lt.s32.totalorder %s238_s26, %s238_s26 }
  0x22   :  { %183 = vmatpush3.bf16.msra.mxu0 %v196_v2  ;;  %p245_p13 = por %p244_p12, %p243_p11 }
  0x24   :  { %v51_v4 = vld [vmem:[#allocation2] sm:$0xff]  ;;  %v52_v8 = vld [vmem:[#allocation2 + $0x8] sm:$0xff]  ;;  %p246_p0 = pnand %p245_p13, %p239_p10 }
  0x25   :  { %185 = vmatmul.mubr.msk.bf16.vlgmr.msra.gmra.mxu0 %vm48_vm0, %v197_v3 }
  0xe5   :  { %v114_v5 = vpop.f32.mrf.mxu0 }
  0xe6   :  { %v121_v6 = vadd.f32 %v114_v5, %v51_v4 }
  0xe7   :  { %v186_v7 = vpop.f32.mrf.mxu0 }
  0xe8   :  { %123 = vst.msk [vmem:[#allocation2] sm:$0xff] %vm48_vm0, %v121_v6 }
  0xe9   :  { %v117_v9 = vpop.f32.mrf.mxu0 }
  0xea   :  { %v122_v10 = vadd.f32 %v117_v9, %v52_v8 }
  0xeb   :  { %v187_v11 = vpop.f32.mrf.mxu0 }
  0xec   :  { %124 = vst.msk [vmem:[#allocation2 + $0x8] sm:$0xff] %vm48_vm0, %v122_v10 }
  0xef   :  { %v128_v13 = vld [vmem:[#allocation2] sm:$0xff] }
  0xf0   :  { %v137_v14 = vadd.f32 %v172_v12, %v128_v13 }
  0xf2   :  { %v175_v15 = vpack.c.bf16 %v137_v14, %v137_v14 }
  0xf3   :  { %v129_v16 = vld [vmem:[#allocation2 + $0x8] sm:$0xff] }
  0xf4   :  { %v138_v17 = vadd.f32 %v172_v12, %v129_v16  ;;  %148 = vst.msk [vmem:[#allocation8] sm:$0xf] %vm147_vm2, %v175_v15 }
  0xf6   :  { %v176_v18 = vpack.c.bf16 %v138_v17, %v138_v17 }
  0xf8   :  { %149 = vst.msk [vmem:[#allocation8 + $0x4] sm:$0xf] %vm147_vm2, %v176_v18 }
  0xf9   :  { %249 = shalt.err (!%p246_p0)
}
  0xfa   :  { %161 = dma.vmem_to_hbm [thread:$0]  %s156_s25, 128, %s320_s3, [#allocation5], %s265_s15, %s265_s15, %s266_s16  }
  0xfb   :  { %262 = dma.done.wait [#allocation5], 128  }
  0xfc   :  { %263 = vsyncadd [#allocation5], 4294967168 }
  0xfd   :  { %165 = vsyncpa [#allocation4], 1 }
  0xfe   :  { %166 = vsyncpa [#allocation7], 1 }
  0xff   :  { %167 = vsyncpa [#allocation5], 1 }

</bundles_post_ra>
